<compile_context>
chip_gen: v6e
topology: v6e:2x2x1
jax: 0.10.0
libtpu: 0.0.40
codegen_flags: <defaults>
</compile_context>

<pallas_src>
import jax
import jax.numpy as jnp
import numpy as np
from jax.experimental import pallas as pl
from jax.experimental.pallas import tpu as pltpu


def _round_up(x: int, m: int) -> int:
    return (x + m - 1) // m * m


_LANE = 128            # vreg lane width: batch-tile granularity (last dim)
_SUBLANE = 8           # vreg sublane width: hidden-dim padding granularity
_MAX_BATCH_TILE = 4096  # lanes per grid step; double-buffered (D,TB)+(1,TB)
                        # f32 tiles stay far under default scoped VMEM on
                        # v5e (16 MiB) / v6e (32 MiB) / v7x (32 MiB)


def _choose_batch_tiling(batch: int) -> tuple[int, int]:
    """Pick (TB, Bp): lane-aligned, balanced tiles; >=2 even tiles for v7x."""
    bp_min = _round_up(batch, _LANE)
    num_tiles = max(1, -(-bp_min // _MAX_BATCH_TILE))
    if bp_min >= 2 * _LANE:
        # v7x has 2 TensorCores: give the "parallel" batch axis an even number
        # of (>= 2) tiles so both cores get equal work.  Free on v5e/v6e.
        num_tiles = _round_up(max(num_tiles, 2), 2)
    tb = _round_up(-(-batch // num_tiles), _LANE)
    return tb, tb * num_tiles


def critic_kernel(x_ref, w1t_ref, b1_ref, w2_ref, b2_ref, out_ref):
    """One batch tile (batch on the lane axis).

    Refs (all VMEM):
      x_ref:   (D,  TB)  [state|action]^T tile (lane-dense)
      w1t_ref: (Hp, D)   fc1 weight, (out x in) layout, zero-padded past H
      b1_ref:  (Hp, 1)   fc1 bias column (zero-padded past H)
      w2_ref:  (Hp, 1)   fc2 weight column (zero-padded past H)
      b2_ref:  (1, 1)    fc2 bias
      out_ref: (1, TB)   q^T tile (lane-dense)
    """
    # Single fused fc1 contraction on the MXU; bias broadcast over lanes.
    h = jnp.tanh(
        jnp.dot(w1t_ref[...], x_ref[...], preferred_element_type=jnp.float32)
        + b1_ref[...]
    )
    # fc2 has a single output unit: VPU multiply + sublane reduce over Hp
    # (Hp is only round_up(H, 8)); padded rows contribute exactly 0 because
    # w2 is zero-padded.  Output row is lane-dense -> unmasked vst + dense DMA.
    out_ref[...] = jnp.sum(h * w2_ref[...], axis=0, keepdims=True) + b2_ref[...]


def prepare_critic_params(w1, b1, w2, b2):
    """One-time packing of parameters into the transposed kernel layout.

    w1: (D, H) fc1 weight in (in_features, out_features) layout, D = Ds + Da
    b1: (H,)
    w2: (H, 1)
    b2: (1,)
    Returns (w1t_p, b1_p, w2_p, b2_p) with H padded to a sublane multiple.
    """
    d, h = w1.shape
    hp = _round_up(max(h, _SUBLANE), _SUBLANE)
    f32 = jnp.float32
    w1t_p = jnp.zeros((hp, d), f32).at[:h, :].set(jnp.asarray(w1, f32).T)
    b1_p = jnp.zeros((hp, 1), f32).at[:h, 0].set(jnp.asarray(b1, f32))
    w2_p = jnp.zeros((hp, 1), f32).at[:h, 0].set(jnp.asarray(w2, f32)[:, 0])
    b2_p = jnp.asarray(b2, f32).reshape(1, 1)
    # NOTE: on v6e/v7x, storing w1t_p (and casting the input tile) to bfloat16
    # with f32 accumulation halves streamed bytes / resident VMEM; kept f32
    # here to preserve the module's f32 numerics exactly.
    return w1t_p, b1_p, w2_p, b2_p


@jax.jit
def critic_forward(state, action, w1t_p, b1_p, w2_p, b2_p):
    """Q(state, action) via the fused Pallas kernel. Returns (B, 1) float32."""
    state = state.astype(jnp.float32)
    action = action.astype(jnp.float32)
    batch = state.shape[0]
    d = state.shape[1] + action.shape[1]
    hp = w1t_p.shape[0]

    tb, bp = _choose_batch_tiling(batch)

    # Fused fc1 input: concatenate once, transpose so batch maps to lanes.
    # This is a cheap one-pass XLA reshuffle; no per-step weight work remains.
    x = jnp.concatenate([state, action], axis=1)            # (B, D)
    if bp != batch:
        x = jnp.pad(x, ((0, bp - batch), (0, 0)))            # pad batch rows only
    x_t = x.T                                                # (D, Bp)

    out = pl.pallas_call(
        critic_kernel,
        out_shape=jax.ShapeDtypeStruct((1, bp), jnp.float32),
        grid=(bp // tb,),
        in_specs=[
            pl.BlockSpec((d, tb), lambda i: (0, i)),     # x^T tile (lane-dense)
            # Resident parameters (constant block index -> fetched once).
            # NOTE: at production D/H on v7x add pipeline_mode=pl.Buffered(1)
            # (and an explicit vmem_limit_bytes) so these are single-buffered;
            # at these sizes the double buffer is negligible.
            pl.BlockSpec((hp, d), lambda i: (0, 0)),     # W1^T
            pl.BlockSpec((hp, 1), lambda i: (0, 0)),     # b1 column
            pl.BlockSpec((hp, 1), lambda i: (0, 0)),     # w2 column
            pl.BlockSpec((1, 1), lambda i: (0, 0)),      # b2
        ],
        out_specs=pl.BlockSpec((1, tb), lambda i: (0, i)),   # lane-dense q^T
        compiler_params=pltpu.CompilerParams(
            dimension_semantics=("parallel",)  # shard batch tiles across TCs (v7x)
        ),
    )(x_t, w1t_p, b1_p, w2_p, b2_p)

    return out[0, :batch].reshape(batch, 1)


def init_critic_params(key, state_size, action_size, fc1_units=2):
    """Deterministic parameter init mirroring the PyTorch module.

    fc1 weight: uniform(-std, std), glorot std = sqrt(2 / (fan_in + fan_out))
    fc2 weight: uniform(-0.003, 0.003)
    biases:     PyTorch nn.Linear default uniform(-1/sqrt(fan_in), 1/sqrt(fan_in))
    Weights are stored as (in_features, out_features).
    """
    in1 = state_size + action_size
    h = fc1_units
    k1, k2, k3, k4 = jax.random.split(key, 4)

    std1 = np.sqrt(2.0 / (in1 + h))
    w1 = jax.random.uniform(k1, (in1, h), jnp.float32, minval=-std1, maxval=std1)
    b1_bound = 1.0 / np.sqrt(in1)
    b1 = jax.random.uniform(k2, (h,), jnp.float32, minval=-b1_bound, maxval=b1_bound)

    w2 = jax.random.uniform(k3, (h, 1), jnp.float32, minval=-0.003, maxval=0.003)
    b2_bound = 1.0 / np.sqrt(h)
    b2 = jax.random.uniform(k4, (1,), jnp.float32, minval=-b2_bound, maxval=b2_bound)
    return w1, b1, w2, b2


if __name__ == "__main__":
    state_size = 4
    action_size = 4
    fc1_units = 2
    batch = 8

    key = jax.random.PRNGKey(0)
    k_state, k_action, k_params = jax.random.split(key, 3)

    state = jax.random.normal(k_state, (batch, state_size), jnp.float32)
    action = jax.random.normal(k_action, (batch, action_size), jnp.float32)
    w1, b1, w2, b2 = init_critic_params(k_params, state_size, action_size, fc1_units)

    # One-time parameter packing (kept across forward calls).
    packed = prepare_critic_params(w1, b1, w2, b2)

    q = critic_forward(state, action, *packed)
    q = jax.block_until_ready(q)

    # Pure-JAX reference check of the fused kernel.
    x = jnp.concatenate([state, action], axis=1)
    ref = jnp.tanh(x @ w1 + b1) @ w2 + b2
    np.testing.assert_allclose(np.asarray(q), np.asarray(ref), rtol=1e-5, atol=1e-5)
    assert q.shape == (batch, 1)

    print("KERNEL_OK")
</pallas_src>

<mosaic_0001>
module attributes {stable_mosaic.version = 11 : i64} {
  func.func @critic_kernel(%arg0: i32, %arg1: memref<8x128xf32, #tpu.memory_space<vmem>>, %arg2: memref<8x8xf32, #tpu.memory_space<vmem>>, %arg3: memref<8x1xf32, #tpu.memory_space<vmem>>, %arg4: memref<8x1xf32, #tpu.memory_space<vmem>>, %arg5: memref<1x1xf32, #tpu.memory_space<vmem>>, %arg6: memref<1x128xf32, #tpu.memory_space<vmem>>) attributes {dimension_semantics = [#tpu.dimension_semantics<parallel>], iteration_bounds = array<i64: 1>, scalar_prefetch = 0 : i64, scratch_operands = 0 : i64, tpu.core_type = #tpu.core_type<tc>, window_params = [{transform_indices = @transform_0, window_bounds = array<i64: 8, 128>}, {pipeline_mode = #tpu.pipeline_mode<synchronous>, transform_indices = @transform_1, window_bounds = array<i64: 8, 8>}, {pipeline_mode = #tpu.pipeline_mode<synchronous>, transform_indices = @transform_2, window_bounds = array<i64: 8, 1>}, {pipeline_mode = #tpu.pipeline_mode<synchronous>, transform_indices = @transform_3, window_bounds = array<i64: 8, 1>}, {pipeline_mode = #tpu.pipeline_mode<synchronous>, transform_indices = @transform_4, window_bounds = array<i64: 1, 1>}, {transform_indices = @transform_5, window_bounds = array<i64: 1, 128>}]} {
    %c0 = arith.constant 0 : index
    %c0_0 = arith.constant 0 : index
    %0 = vector.load %arg2[%c0, %c0_0] : memref<8x8xf32, #tpu.memory_space<vmem>>, vector<8x8xf32>
    %c0_1 = arith.constant 0 : index
    %c0_2 = arith.constant 0 : index
    %1 = vector.load %arg1[%c0_1, %c0_2] : memref<8x128xf32, #tpu.memory_space<vmem>>, vector<8x128xf32>
    %cst = arith.constant dense<0.000000e+00> : vector<8x128xf32>
    %2 = tpu.matmul %0, %1, %cst {dimension_numbers = #tpu.dot_dimension_numbers<[1], [0], [0], [1], [0, 0, 1, 1], [], []>} : vector<8x8xf32>, vector<8x128xf32>, vector<8x128xf32> -> vector<8x128xf32>
    %c0_3 = arith.constant 0 : index
    %c0_4 = arith.constant 0 : index
    %3 = vector.load %arg3[%c0_3, %c0_4] : memref<8x1xf32, #tpu.memory_space<vmem>>, vector<8x1xf32>
    %4 = vector.broadcast %3 : vector<8x1xf32> to vector<8x128xf32>
    %5 = arith.addf %2, %4 : vector<8x128xf32>
    %6 = math.tanh %5 : vector<8x128xf32>
    %c0_5 = arith.constant 0 : index
    %c0_6 = arith.constant 0 : index
    %7 = vector.load %arg4[%c0_5, %c0_6] : memref<8x1xf32, #tpu.memory_space<vmem>>, vector<8x1xf32>
    %8 = vector.broadcast %7 : vector<8x1xf32> to vector<8x128xf32>
    %9 = arith.mulf %6, %8 : vector<8x128xf32>
    %cst_7 = arith.constant dense<0.000000e+00> : vector<128xf32>
    %10 = vector.multi_reduction <add>, %9, %cst_7 [0] : vector<8x128xf32> to vector<128xf32>
    %11 = vector.shape_cast %10 : vector<128xf32> to vector<1x128xf32>
    %c0_8 = arith.constant 0 : index
    %c0_9 = arith.constant 0 : index
    %12 = vector.load %arg5[%c0_8, %c0_9] : memref<1x1xf32, #tpu.memory_space<vmem>>, vector<1x1xf32>
    %13 = vector.broadcast %12 : vector<1x1xf32> to vector<1x128xf32>
    %14 = arith.addf %11, %13 : vector<1x128xf32>
    %c0_10 = arith.constant 0 : index
    %c0_11 = arith.constant 0 : index
    %15 = vector.load %arg6[%c0_10, %c0_11] : memref<1x128xf32, #tpu.memory_space<vmem>>, vector<1x128xf32>
    tpu.vector_store %arg6[%c0_10, %c0_11], %14 {strides = array<i32>} : memref<1x128xf32, #tpu.memory_space<vmem>>, vector<1x128xf32>,
    return
  }
  func.func @transform_0(%arg0: i32) -> (i32, i32) {
    %c0_i32 = arith.constant 0 : i32
    %c0_i32_0 = arith.constant 0 : i32
    return %c0_i32, %arg0 : i32, i32
  }
  func.func @transform_1(%arg0: i32) -> (i32, i32) {
    %c0_i32 = arith.constant 0 : i32
    %c0_i32_0 = arith.constant 0 : i32
    %c0_i32_1 = arith.constant 0 : i32
    return %c0_i32, %c0_i32_0 : i32, i32
  }
  func.func @transform_2(%arg0: i32) -> (i32, i32) {
    %c0_i32 = arith.constant 0 : i32
    %c0_i32_0 = arith.constant 0 : i32
    %c0_i32_1 = arith.constant 0 : i32
    return %c0_i32, %c0_i32_0 : i32, i32
  }
  func.func @transform_3(%arg0: i32) -> (i32, i32) {
    %c0_i32 = arith.constant 0 : i32
    %c0_i32_0 = arith.constant 0 : i32
    %c0_i32_1 = arith.constant 0 : i32
    return %c0_i32, %c0_i32_0 : i32, i32
  }
  func.func @transform_4(%arg0: i32) -> (i32, i32) {
    %c0_i32 = arith.constant 0 : i32
    %c0_i32_0 = arith.constant 0 : i32
    %c0_i32_1 = arith.constant 0 : i32
    return %c0_i32, %c0_i32_0 : i32, i32
  }
  func.func @transform_5(%arg0: i32) -> (i32, i32) {
    %c0_i32 = arith.constant 0 : i32
    %c0_i32_0 = arith.constant 0 : i32
    return %c0_i32, %arg0 : i32, i32
  }
}

</mosaic_0001>

<bundles_post_ra>
// kernel: critic_forward.1
= control target key start
LH: loop header
LB: loop body
LE: loop exit
PB: predicated region body
PF: predicated region fallthrough
CT: control target
= control target key end

     0   :  { %vm30_vm0 = vcmask 64512   ;;  %v149_v0 = vmov 0.0   ;;  %vm150_vm1 = vmmov 0   ;;  %v151_v5 = vmov 0   ;;  %s201_s0 = inlined_call_operand.vmem [shape: f32[8,128], index: 0, kind: input, shape index: {}]   ;;  %s202_s1 = inlined_call_operand.vmem [shape: f32[8,8], index: 1, kind: input, shape index: {}]   ;;  %s203_s2 = inlined_call_operand.vmem [shape: f32[8,1], index: 2, kind: input, shape index: {}]   ;;  %s204_s4 = inlined_call_operand.<no memory space> [shape: f32[1,1], index: 4, kind: input, shape index: {}]   ;;  %s205_s3 = inlined_call_operand.vmem [shape: f32[8,1], index: 3, kind: input, shape index: {}]   ;;  %s206_s5 = inlined_call_operand.vmem [shape: f32[1,128], index: 5, kind: output, shape index: {}]  }
   0x1   :  { %137 = vmatprep.subr.mxu0 %v149_v0  ;;  %v23_v1 = vld [vmem:[%s201_s0] sm:$0xff]  ;;  %139 = vmatprep.mubr.msk.f32.mxu0 %vm150_vm1, %v149_v0  ;;  %v10_v4 = vstv %s204_s4  ;;  %v124_v12 = vlaneseq }
   0x2   :  { %v22_v2 = vld [vmem:[%s202_s1] sm:$0xff]  ;;  %138 = vmatpush3.msra.mxu0 %v23_v1  ;;  %145 = vset.pattern.permute.xlu0 %v151_v5  ;;  %11 = vst [vmem:[#allocation2] sm:$0x1] %v10_v4 }
   0x3   :  { %v24_v3 = vld [vmem:[%s203_s2] sm:$0xff]  ;;  %140 = vmatmul.mubr.msk.f32.vlgmr.msra.gmra.mxu0 %vm30_vm0, %v22_v2  ;;  %146 = vset.pattern.permute.xlu1 %v151_v5  ;;  %v125_v16 = vshrl.u32 %v124_v12, 7 }
   0x4   :  { %27 = vperm.xlu0 %145, %v24_v3   ;;  %v105_v6 = vld [vmem:[%s205_s3] sm:$0xff] }
   0x5   :  { %v126_v19 = vsub.s32 0, %v125_v16 }
   0x8   :  { %108 = vperm.xlu0 %145, %v105_v6  }
   0x9   :  { %v118_v7 = vld [vmem:[#allocation2] sm:$0x1] }
   0xa   :  { %121 = vperm.xlu1 %146, %v118_v7  }
  0x7f   :  { %v28_v8 = vpop.permute.xlu0 %27 }
  0x83   :  { %v109_v14 = vpop.permute.xlu0 %108 }
  0x85   :  { %v122_v21 = vpop.permute.xlu1 %121 }
  0x86   :  { %v127_v24 = vrot.slane %v122_v21, %v126_v19 }
  0xc3   :  { %v100_v9 = vpop.f32.mrf.mxu0 }
  0xc4   :  { %v101_v10 = vadd.f32 %v100_v9, %v28_v8 }
  0xc5   :  { %v141_v11 = vpop.f32.mrf.mxu0 }
  0xc6   :  { %147 = vtanh.f32 %v101_v10 }
  0xd3   :  { %v148_v13 = vpop.eup %147 }
  0xd4   :  { %v111_v15 = vmul.f32 %v148_v13, %v109_v14 }
  0xd6   :  { %v112_v17 = vrot.slane %v111_v15, 4 }
  0xd8   :  { %v113_v18 = vadd.f32 %v112_v17, %v111_v15 }
  0xda   :  { %v114_v20 = vrot.slane %v113_v18, 2 }
  0xdc   :  { %v115_v22 = vadd.f32 %v114_v20, %v113_v18 }
  0xde   :  { %v116_v23 = vrot.slane %v115_v22, 1 }
  0xe0   :  { %v117_v25 = vadd.f32 %v116_v23, %v115_v22 }
  0xe2   :  { %v128_v26 = vadd.f32 %v127_v24, %v117_v25 }
  0xe4   :  { %129 = vst [vmem:[%s206_s5] sm:$0x1] %v128_v26 }

</bundles_post_ra>
